<compile_context>
chip_gen: v7x
topology: tpu7x:2x2x1
jax: 0.10.0
libtpu: 0.0.40
codegen_flags: <defaults>
</compile_context>

<pallas_src>
import functools
import numpy as np

import jax
import jax.numpy as jnp
from jax import lax
from jax.experimental import pallas as pl
from jax.experimental.pallas import tpu as pltpu


_INTERLEAVE = 4            # independent walks processed per outer iteration
_RAND_BITS = 15            # u in [0, 2^15); offset = (u * deg) >> 15
_SMEM_BUDGET_BYTES = 512 * 1024   # conservative per-core SMEM budget


def _next_pow2(x):
    x = int(x)
    return 1 if x <= 1 else 1 << (x - 1).bit_length()


def _bucket(x, minimum=8):
    # power-of-two bucketing of static sizes -> bounded number of compiles;
    # minimum 8 also guarantees divisibility by _INTERLEAVE.
    return max(minimum, _next_pow2(x))


# ----------------------------------------------------------------------------
# Pallas kernel: random walks over a CSR graph (all scalar / SMEM work)
# ----------------------------------------------------------------------------
def _walk_kernel(col_ref, rowptr_ref, start_ref, rand_ref, eid_ref, *,
                 e_pad, s_pad, walk_length):
    """eid_ref[s*L + t] = node visited at step t of walk s (the reference's
    e_id = current_node), or -1 if that step was not taken."""
    E, SP, L = e_pad, s_pad, walk_length

    def one_walk_step(base, t, cur, alive):
        lo = rowptr_ref[cur]
        hi = rowptr_ref[cur + 1]
        deg = hi - lo
        alive = jnp.logical_and(alive, deg > 0)
        # Reference appends e_id = current_node only when a step is taken.
        eid_ref[base + t] = jnp.where(alive, cur, jnp.int32(-1))
        u = rand_ref[base + t]
        # Lemire-style multiply-shift sampler: floor(u/2^15 * deg).  No integer
        # divide/remainder on the critical path.  No int32 overflow because
        # u < 2^15 and max degree < 2^16 (guarded on the host).
        off = (u * deg) >> _RAND_BITS
        idx = jnp.minimum(lo + off, E - 1)   # clamp keeps dead walks in-bounds
        nxt = col_ref[idx]
        cur = jnp.where(alive, nxt, cur)
        return cur, alive

    def group_body(g, carry_unused):
        # Hoist per-walk base offsets; t is a Python constant under unroll.
        b0 = g * (_INTERLEAVE * L)
        init = []
        for j in range(_INTERLEAVE):
            cur0 = start_ref[g * _INTERLEAVE + j]
            init.append(cur0)
            init.append(cur0 >= 0)     # always True; padded walks die at t=0
                                       # because their sentinel start has deg 0

        def step(t, carry):
            out = []
            for j in range(_INTERLEAVE):
                cur, alive = carry[2 * j], carry[2 * j + 1]
                cur, alive = one_walk_step(b0 + j * L, t, cur, alive)
                out.append(cur)
                out.append(alive)
            return tuple(out)

        # L is a small compile-time constant: unroll for the LLO scheduler.
        lax.fori_loop(0, L, step, tuple(init), unroll=True)
        return carry_unused

    lax.fori_loop(0, SP // _INTERLEAVE, group_body, 0)


@functools.lru_cache(maxsize=64)
def _build_walk_fn(e_pad, n_pad, s_pad, walk_length):
    del n_pad  # shape-only; kept in the cache key for clarity
    kernel = functools.partial(_walk_kernel, e_pad=e_pad, s_pad=s_pad,
                               walk_length=walk_length)
    call = pl.pallas_call(
        kernel,
        out_shape=jax.ShapeDtypeStruct((s_pad * walk_length,), jnp.int32),
        in_specs=[pl.BlockSpec(memory_space=pltpu.MemorySpace.SMEM)] * 4,
        out_specs=pl.BlockSpec(memory_space=pltpu.MemorySpace.SMEM),
    )
    return jax.jit(call)


def _run_walks_device(col, rowptr, starts, rand, walk_length):
    """Run the Pallas walk kernel.

    col: (E,) int32 CSR columns (rows already sorted); rowptr: (N+1,) int32;
    starts: (S,) int32; rand: (S*L,) int32 in [0, 2**_RAND_BITS).
    Returns e_id of shape (S*L,) int32 with -1 sentinels, or None if the
    problem does not fit the all-SMEM kernel (caller falls back to numpy).
    """
    E = int(col.shape[0])
    N = int(rowptr.shape[0]) - 1
    S = int(starts.shape[0])
    L = int(walk_length)
    if E == 0 or S == 0:
        return np.full(S * L, -1, np.int32)

    e_pad = _bucket(E)
    n_pad = _bucket(N + 1)          # >= N + 1 so node n_pad-1 has degree 0
    s_pad = _bucket(S)

    # Guard: multiply-shift sampler needs max degree < 2^(31 - _RAND_BITS).
    max_deg = int(np.max(rowptr[1:] - rowptr[:-1])) if N > 0 else 0
    if max_deg >= (1 << (31 - _RAND_BITS)):
        return None

    # Guard: all four inputs + the output must fit SMEM (1-D arrays round up
    # to next_pow2(4*len) bytes each).
    smem_bytes = (_next_pow2(4 * e_pad) + _next_pow2(4 * (n_pad + 1)) +
                  _next_pow2(4 * s_pad) + 2 * _next_pow2(4 * s_pad * L))
    if smem_bytes > _SMEM_BUDGET_BYTES:
        # TODO(synk): chunk the walks / window col into SMEM instead of
        # falling back to the host for very large graphs.
        return None

    col_p = np.zeros(e_pad, np.int32)
    col_p[:E] = col
    rowptr_p = np.full(n_pad + 1, E, np.int32)
    rowptr_p[:N + 1] = rowptr
    sentinel = n_pad - 1                     # padded node with degree 0
    starts_p = np.full(s_pad, sentinel, np.int32)
    starts_p[:S] = starts
    rand_p = np.zeros(s_pad * L, np.int32)
    rand_p[:S * L] = rand

    fn = _build_walk_fn(e_pad, n_pad, s_pad, L)
    e_id = fn(jnp.asarray(col_p), jnp.asarray(rowptr_p),
              jnp.asarray(starts_p), jnp.asarray(rand_p))
    e_id = np.asarray(jax.block_until_ready(e_id))
    return e_id[:S * L]


def _walk_numpy(col, rowptr, starts, rand, walk_length):
    """Bit-exact numpy reference / fallback for the Pallas walk kernel."""
    S, L = int(starts.shape[0]), int(walk_length)
    e_id = np.full(S * L, -1, np.int32)
    for s in range(S):
        cur = int(starts[s])
        for t in range(L):
            lo, hi = int(rowptr[cur]), int(rowptr[cur + 1])
            deg = hi - lo
            if deg == 0:
                break
            e_id[s * L + t] = cur
            u = int(rand[s * L + t])
            cur = int(col[lo + ((u * deg) >> _RAND_BITS)])
    return e_id


# ----------------------------------------------------------------------------
# Host-side glue (sorting, start-node sampling, dynamic-shape selection)
# ----------------------------------------------------------------------------
def _to_undirected_np(edge_index, num_nodes):
    if edge_index.shape[1] == 0:
        return edge_index
    row, col = edge_index
    r = np.concatenate([row, col]).astype(np.int64)
    c = np.concatenate([col, row]).astype(np.int64)
    keys = np.unique(r * num_nodes + c)           # coalesce: sort + dedup
    return np.stack([keys // num_nodes, keys % num_nodes]).astype(np.int32)


def mask_path_forward(edge_index, *, p=0.7, walks_per_node=1, walk_length=3,
                      start='node', num_nodes=None, undirected=True,
                      key=None, training=True):
    if p < 0.0 or p > 1.0:
        raise ValueError(f"Sample probability has to be between 0 and 1 (got {p}")
    assert start in ['node', 'edge']
    if key is None:
        key = jax.random.PRNGKey(0)
    edge_index = np.asarray(edge_index, dtype=np.int32)
    E = edge_index.shape[1]

    if num_nodes is not None:
        N = int(num_nodes)
    elif E > 0:
        N = int(edge_index.max()) + 1
    else:
        N = 0

    if not training or p == 0.0 or E == 0:
        # Note: the reference returns the boolean mask as the second element
        # on this branch; we return the (empty) masked edge set instead.
        remaining = edge_index
        masked = edge_index[:, np.zeros(E, dtype=bool)]
        if undirected:
            remaining = _to_undirected_np(remaining, max(N, 1))
        return remaining, masked

    # sort_edge_index: stable sort by row * N + col
    keys = edge_index[0].astype(np.int64) * N + edge_index[1].astype(np.int64)
    perm = np.argsort(keys, kind='stable')
    edge_index = edge_index[:, perm]
    row, col = edge_index

    k1, k2 = jax.random.split(key)
    if start == 'edge':
        samp = np.asarray(jax.random.uniform(k1, (E,))) <= p
        base = np.tile(row[samp], walks_per_node)
    else:
        nperm = np.asarray(jax.random.permutation(k1, N))
        base = np.tile(nperm[: int(round(N * p))], walks_per_node)
    # The reference repeats `start` by walks_per_node AND loops
    # `for _ in range(walks_per_node)` over it, i.e. walks_per_node**2 walks
    # per sampled start node; we reproduce that behaviour faithfully.
    starts = np.tile(base, walks_per_node).astype(np.int32)
    S = int(starts.shape[0])
    L = int(walk_length)

    if S == 0:
        mask = np.ones(E, dtype=bool)
    else:
        # Host-side CSR rowptr: bincount + cumsum on the (already sorted) rows.
        rowptr = np.zeros(N + 1, dtype=np.int32)
        rowptr[1:] = np.cumsum(np.bincount(row, minlength=N)).astype(np.int32)

        rand = np.asarray(jax.random.randint(
            k2, (S * L,), 0, 1 << _RAND_BITS, dtype=jnp.int32))

        e_id = _run_walks_device(col, rowptr, starts, rand, L)
        if e_id is None:
            # Problem too large for the all-SMEM kernel (or max degree too
            # big for the multiply-shift sampler): equivalent host walk.
            e_id = _walk_numpy(col, rowptr, starts, rand, L)

        # edge_mask[e_id] = False (the reference indexes the length-E mask
        # with visited *node* ids).  Node ids >= E would raise in PyTorch; we
        # drop them -- documented divergence for that degenerate case.
        e_id = e_id[(e_id >= 0) & (e_id < E)]
        mask = np.ones(E, dtype=bool)
        mask[e_id] = False

    remaining = edge_index[:, mask]
    masked = edge_index[:, ~mask]
    if undirected:
        # TODO(synk): to_undirected/coalesce and the boolean edge selections
        # above have data-dependent output shapes -- no clean Pallas
        # equivalent, kept as host-side numpy glue.
        remaining = _to_undirected_np(remaining, N)
    return remaining, masked


# ----------------------------------------------------------------------------
if __name__ == "__main__":
    key = jax.random.PRNGKey(0)
    kg, kw = jax.random.split(key)

    # small deterministic random graph: 12 nodes, 48 directed edges
    N_NODES, N_EDGES = 12, 48
    k1, k2 = jax.random.split(kg)
    row = jax.random.randint(k1, (N_EDGES,), 0, N_NODES, dtype=jnp.int32)
    col = jax.random.randint(k2, (N_EDGES,), 0, N_NODES, dtype=jnp.int32)
    edge_index = jnp.stack([row, col])  # [2, E]

    # --- cross-check the Pallas walk kernel against the numpy reference ---
    keys_s = np.asarray(row, np.int64) * N_NODES + np.asarray(col, np.int64)
    perm = np.argsort(keys_s, kind='stable')
    srow = np.asarray(row)[perm].astype(np.int32)
    scol = np.asarray(col)[perm].astype(np.int32)
    rowptr = np.zeros(N_NODES + 1, np.int32)
    rowptr[1:] = np.cumsum(np.bincount(srow, minlength=N_NODES)).astype(np.int32)
    starts = np.arange(0, N_NODES, 2, dtype=np.int32)          # 6 walks
    L = 3
    rand = np.asarray(jax.random.randint(jax.random.PRNGKey(7),
                                         (starts.shape[0] * L,), 0,
                                         1 << _RAND_BITS, dtype=jnp.int32))
    got = _run_walks_device(scol, rowptr, starts, rand, L)
    assert got is not None, "demo problem should fit the all-SMEM kernel"
    want = _walk_numpy(scol, rowptr, starts, rand, L)
    assert np.array_equal(got, want), (got, want)

    # --- full MaskPath forward ---
    remaining_edges, masked_edges = mask_path_forward(
        edge_index, p=0.7, walks_per_node=1, walk_length=3, start='node',
        num_nodes=None, undirected=True, key=kw, training=True)

    # basic sanity checks
    assert remaining_edges.shape[0] == 2 and masked_edges.shape[0] == 2
    assert masked_edges.shape[1] <= N_EDGES
    _ = jax.block_until_ready(jnp.asarray(remaining_edges))
    _ = jax.block_until_ready(jnp.asarray(masked_edges))
    print("KERNEL_OK")
</pallas_src>

<mosaic_0001>
module attributes {stable_mosaic.version = 11 : i64} {
  func.func @_walk_kernel(%arg0: memref<64xi32, #tpu.memory_space<smem>>, %arg1: memref<17xi32, #tpu.memory_space<smem>>, %arg2: memref<8xi32, #tpu.memory_space<smem>>, %arg3: memref<24xi32, #tpu.memory_space<smem>>, %arg4: memref<24xi32, #tpu.memory_space<smem>>) attributes {dimension_semantics = [], scalar_prefetch = 0 : i64, scratch_operands = 0 : i64, tpu.core_type = #tpu.core_type<tc>} {
    %c0_i32 = arith.constant 0 : i32
    %c2_i32 = arith.constant 2 : i32
    %0 = arith.addi %c0_i32, %c2_i32 : i32
    %c1_i32 = arith.constant 1 : i32
    scf.for %arg5 = %c0_i32 to %0 step %c1_i32  : i32 {
      %c12_i32 = arith.constant 12 : i32
      %1 = arith.muli %arg5, %c12_i32 : i32
      %c4_i32 = arith.constant 4 : i32
      %2 = arith.muli %arg5, %c4_i32 : i32
      %c0_i32_1 = arith.constant 0 : i32
      %3 = arith.addi %2, %c0_i32_1 : i32
      %4 = arith.index_cast %3 : i32 to index
      %5 = memref.load %arg2[%4] : memref<8xi32, #tpu.memory_space<smem>>
      %c0_i32_2 = arith.constant 0 : i32
      %6 = arith.cmpi sge, %5, %c0_i32_2 : i32
      %c4_i32_3 = arith.constant 4 : i32
      %7 = arith.muli %arg5, %c4_i32_3 : i32
      %c1_i32_4 = arith.constant 1 : i32
      %8 = arith.addi %7, %c1_i32_4 : i32
      %9 = arith.index_cast %8 : i32 to index
      %10 = memref.load %arg2[%9] : memref<8xi32, #tpu.memory_space<smem>>
      %c0_i32_5 = arith.constant 0 : i32
      %11 = arith.cmpi sge, %10, %c0_i32_5 : i32
      %c4_i32_6 = arith.constant 4 : i32
      %12 = arith.muli %arg5, %c4_i32_6 : i32
      %c2_i32_7 = arith.constant 2 : i32
      %13 = arith.addi %12, %c2_i32_7 : i32
      %14 = arith.index_cast %13 : i32 to index
      %15 = memref.load %arg2[%14] : memref<8xi32, #tpu.memory_space<smem>>
      %c0_i32_8 = arith.constant 0 : i32
      %16 = arith.cmpi sge, %15, %c0_i32_8 : i32
      %c4_i32_9 = arith.constant 4 : i32
      %17 = arith.muli %arg5, %c4_i32_9 : i32
      %c3_i32 = arith.constant 3 : i32
      %18 = arith.addi %17, %c3_i32 : i32
      %19 = arith.index_cast %18 : i32 to index
      %20 = memref.load %arg2[%19] : memref<8xi32, #tpu.memory_space<smem>>
      %c0_i32_10 = arith.constant 0 : i32
      %21 = arith.cmpi sge, %20, %c0_i32_10 : i32
      %c0_i32_11 = arith.constant 0 : i32
      %c0_i32_12 = arith.constant 0 : i32
      %22 = arith.addi %1, %c0_i32_12 : i32
      %23 = arith.index_cast %5 : i32 to index
      %24 = memref.load %arg1[%23] : memref<17xi32, #tpu.memory_space<smem>>
      %c1_i32_13 = arith.constant 1 : i32
      %25 = arith.addi %5, %c1_i32_13 : i32
      %26 = arith.index_cast %25 : i32 to index
      %27 = memref.load %arg1[%26] : memref<17xi32, #tpu.memory_space<smem>>
      %28 = arith.subi %27, %24 : i32
      %c0_i32_14 = arith.constant 0 : i32
      %29 = arith.cmpi sgt, %28, %c0_i32_14 : i32
      %30 = arith.andi %6, %29 : i1
      %c-1_i32 = arith.constant -1 : i32
      %31 = arith.select %30, %5, %c-1_i32 : i32
      %32 = arith.addi %22, %c0_i32_11 : i32
      %33 = arith.index_cast %32 : i32 to index
      %34 = memref.load %arg4[%33] : memref<24xi32, #tpu.memory_space<smem>>
      memref.store %31, %arg4[%33] : memref<24xi32, #tpu.memory_space<smem>>
      %35 = arith.addi %22, %c0_i32_11 : i32
      %36 = arith.index_cast %35 : i32 to index
      %37 = memref.load %arg3[%36] : memref<24xi32, #tpu.memory_space<smem>>
      %38 = arith.muli %37, %28 : i32
      %c15_i32 = arith.constant 15 : i32
      %39 = arith.shrsi %38, %c15_i32 : i32
      %40 = arith.addi %24, %39 : i32
      %c63_i32 = arith.constant 63 : i32
      %41 = arith.minsi %40, %c63_i32 : i32
      %42 = arith.index_cast %41 : i32 to index
      %43 = memref.load %arg0[%42] : memref<64xi32, #tpu.memory_space<smem>>
      %44 = arith.select %30, %43, %5 : i32
      %c3_i32_15 = arith.constant 3 : i32
      %45 = arith.addi %1, %c3_i32_15 : i32
      %46 = arith.index_cast %10 : i32 to index
      %47 = memref.load %arg1[%46] : memref<17xi32, #tpu.memory_space<smem>>
      %c1_i32_16 = arith.constant 1 : i32
      %48 = arith.addi %10, %c1_i32_16 : i32
      %49 = arith.index_cast %48 : i32 to index
      %50 = memref.load %arg1[%49] : memref<17xi32, #tpu.memory_space<smem>>
      %51 = arith.subi %50, %47 : i32
      %c0_i32_17 = arith.constant 0 : i32
      %52 = arith.cmpi sgt, %51, %c0_i32_17 : i32
      %53 = arith.andi %11, %52 : i1
      %c-1_i32_18 = arith.constant -1 : i32
      %54 = arith.select %53, %10, %c-1_i32_18 : i32
      %55 = arith.addi %45, %c0_i32_11 : i32
      %56 = arith.index_cast %55 : i32 to index
      %57 = memref.load %arg4[%56] : memref<24xi32, #tpu.memory_space<smem>>
      memref.store %54, %arg4[%56] : memref<24xi32, #tpu.memory_space<smem>>
      %58 = arith.addi %45, %c0_i32_11 : i32
      %59 = arith.index_cast %58 : i32 to index
      %60 = memref.load %arg3[%59] : memref<24xi32, #tpu.memory_space<smem>>
      %61 = arith.muli %60, %51 : i32
      %c15_i32_19 = arith.constant 15 : i32
      %62 = arith.shrsi %61, %c15_i32_19 : i32
      %63 = arith.addi %47, %62 : i32
      %c63_i32_20 = arith.constant 63 : i32
      %64 = arith.minsi %63, %c63_i32_20 : i32
      %65 = arith.index_cast %64 : i32 to index
      %66 = memref.load %arg0[%65] : memref<64xi32, #tpu.memory_space<smem>>
      %67 = arith.select %53, %66, %10 : i32
      %c6_i32 = arith.constant 6 : i32
      %68 = arith.addi %1, %c6_i32 : i32
      %69 = arith.index_cast %15 : i32 to index
      %70 = memref.load %arg1[%69] : memref<17xi32, #tpu.memory_space<smem>>
      %c1_i32_21 = arith.constant 1 : i32
      %71 = arith.addi %15, %c1_i32_21 : i32
      %72 = arith.index_cast %71 : i32 to index
      %73 = memref.load %arg1[%72] : memref<17xi32, #tpu.memory_space<smem>>
      %74 = arith.subi %73, %70 : i32
      %c0_i32_22 = arith.constant 0 : i32
      %75 = arith.cmpi sgt, %74, %c0_i32_22 : i32
      %76 = arith.andi %16, %75 : i1
      %c-1_i32_23 = arith.constant -1 : i32
      %77 = arith.select %76, %15, %c-1_i32_23 : i32
      %78 = arith.addi %68, %c0_i32_11 : i32
      %79 = arith.index_cast %78 : i32 to index
      %80 = memref.load %arg4[%79] : memref<24xi32, #tpu.memory_space<smem>>
      memref.store %77, %arg4[%79] : memref<24xi32, #tpu.memory_space<smem>>
      %81 = arith.addi %68, %c0_i32_11 : i32
      %82 = arith.index_cast %81 : i32 to index
      %83 = memref.load %arg3[%82] : memref<24xi32, #tpu.memory_space<smem>>
      %84 = arith.muli %83, %74 : i32
      %c15_i32_24 = arith.constant 15 : i32
      %85 = arith.shrsi %84, %c15_i32_24 : i32
      %86 = arith.addi %70, %85 : i32
      %c63_i32_25 = arith.constant 63 : i32
      %87 = arith.minsi %86, %c63_i32_25 : i32
      %88 = arith.index_cast %87 : i32 to index
      %89 = memref.load %arg0[%88] : memref<64xi32, #tpu.memory_space<smem>>
      %90 = arith.select %76, %89, %15 : i32
      %c9_i32 = arith.constant 9 : i32
      %91 = arith.addi %1, %c9_i32 : i32
      %92 = arith.index_cast %20 : i32 to index
      %93 = memref.load %arg1[%92] : memref<17xi32, #tpu.memory_space<smem>>
      %c1_i32_26 = arith.constant 1 : i32
      %94 = arith.addi %20, %c1_i32_26 : i32
      %95 = arith.index_cast %94 : i32 to index
      %96 = memref.load %arg1[%95] : memref<17xi32, #tpu.memory_space<smem>>
      %97 = arith.subi %96, %93 : i32
      %c0_i32_27 = arith.constant 0 : i32
      %98 = arith.cmpi sgt, %97, %c0_i32_27 : i32
      %99 = arith.andi %21, %98 : i1
      %c-1_i32_28 = arith.constant -1 : i32
      %100 = arith.select %99, %20, %c-1_i32_28 : i32
      %101 = arith.addi %91, %c0_i32_11 : i32
      %102 = arith.index_cast %101 : i32 to index
      %103 = memref.load %arg4[%102] : memref<24xi32, #tpu.memory_space<smem>>
      memref.store %100, %arg4[%102] : memref<24xi32, #tpu.memory_space<smem>>
      %104 = arith.addi %91, %c0_i32_11 : i32
      %105 = arith.index_cast %104 : i32 to index
      %106 = memref.load %arg3[%105] : memref<24xi32, #tpu.memory_space<smem>>
      %107 = arith.muli %106, %97 : i32
      %c15_i32_29 = arith.constant 15 : i32
      %108 = arith.shrsi %107, %c15_i32_29 : i32
      %109 = arith.addi %93, %108 : i32
      %c63_i32_30 = arith.constant 63 : i32
      %110 = arith.minsi %109, %c63_i32_30 : i32
      %111 = arith.index_cast %110 : i32 to index
      %112 = memref.load %arg0[%111] : memref<64xi32, #tpu.memory_space<smem>>
      %113 = arith.select %99, %112, %20 : i32
      %c1_i32_31 = arith.constant 1 : i32
      %c0_i32_32 = arith.constant 0 : i32
      %114 = arith.addi %1, %c0_i32_32 : i32
      %115 = arith.index_cast %44 : i32 to index
      %116 = memref.load %arg1[%115] : memref<17xi32, #tpu.memory_space<smem>>
      %c1_i32_33 = arith.constant 1 : i32
      %117 = arith.addi %44, %c1_i32_33 : i32
      %118 = arith.index_cast %117 : i32 to index
      %119 = memref.load %arg1[%118] : memref<17xi32, #tpu.memory_space<smem>>
      %120 = arith.subi %119, %116 : i32
      %c0_i32_34 = arith.constant 0 : i32
      %121 = arith.cmpi sgt, %120, %c0_i32_34 : i32
      %122 = arith.andi %30, %121 : i1
      %c-1_i32_35 = arith.constant -1 : i32
      %123 = arith.select %122, %44, %c-1_i32_35 : i32
      %124 = arith.addi %114, %c1_i32_31 : i32
      %125 = arith.index_cast %124 : i32 to index
      %126 = memref.load %arg4[%125] : memref<24xi32, #tpu.memory_space<smem>>
      memref.store %123, %arg4[%125] : memref<24xi32, #tpu.memory_space<smem>>
      %127 = arith.addi %114, %c1_i32_31 : i32
      %128 = arith.index_cast %127 : i32 to index
      %129 = memref.load %arg3[%128] : memref<24xi32, #tpu.memory_space<smem>>
      %130 = arith.muli %129, %120 : i32
      %c15_i32_36 = arith.constant 15 : i32
      %131 = arith.shrsi %130, %c15_i32_36 : i32
      %132 = arith.addi %116, %131 : i32
      %c63_i32_37 = arith.constant 63 : i32
      %133 = arith.minsi %132, %c63_i32_37 : i32
      %134 = arith.index_cast %133 : i32 to index
      %135 = memref.load %arg0[%134] : memref<64xi32, #tpu.memory_space<smem>>
      %136 = arith.select %122, %135, %44 : i32
      %c3_i32_38 = arith.constant 3 : i32
      %137 = arith.addi %1, %c3_i32_38 : i32
      %138 = arith.index_cast %67 : i32 to index
      %139 = memref.load %arg1[%138] : memref<17xi32, #tpu.memory_space<smem>>
      %c1_i32_39 = arith.constant 1 : i32
      %140 = arith.addi %67, %c1_i32_39 : i32
      %141 = arith.index_cast %140 : i32 to index
      %142 = memref.load %arg1[%141] : memref<17xi32, #tpu.memory_space<smem>>
      %143 = arith.subi %142, %139 : i32
      %c0_i32_40 = arith.constant 0 : i32
      %144 = arith.cmpi sgt, %143, %c0_i32_40 : i32
      %145 = arith.andi %53, %144 : i1
      %c-1_i32_41 = arith.constant -1 : i32
      %146 = arith.select %145, %67, %c-1_i32_41 : i32
      %147 = arith.addi %137, %c1_i32_31 : i32
      %148 = arith.index_cast %147 : i32 to index
      %149 = memref.load %arg4[%148] : memref<24xi32, #tpu.memory_space<smem>>
      memref.store %146, %arg4[%148] : memref<24xi32, #tpu.memory_space<smem>>
      %150 = arith.addi %137, %c1_i32_31 : i32
      %151 = arith.index_cast %150 : i32 to index
      %152 = memref.load %arg3[%151] : memref<24xi32, #tpu.memory_space<smem>>
      %153 = arith.muli %152, %143 : i32
      %c15_i32_42 = arith.constant 15 : i32
      %154 = arith.shrsi %153, %c15_i32_42 : i32
      %155 = arith.addi %139, %154 : i32
      %c63_i32_43 = arith.constant 63 : i32
      %156 = arith.minsi %155, %c63_i32_43 : i32
      %157 = arith.index_cast %156 : i32 to index
      %158 = memref.load %arg0[%157] : memref<64xi32, #tpu.memory_space<smem>>
      %159 = arith.select %145, %158, %67 : i32
      %c6_i32_44 = arith.constant 6 : i32
      %160 = arith.addi %1, %c6_i32_44 : i32
      %161 = arith.index_cast %90 : i32 to index
      %162 = memref.load %arg1[%161] : memref<17xi32, #tpu.memory_space<smem>>
      %c1_i32_45 = arith.constant 1 : i32
      %163 = arith.addi %90, %c1_i32_45 : i32
      %164 = arith.index_cast %163 : i32 to index
      %165 = memref.load %arg1[%164] : memref<17xi32, #tpu.memory_space<smem>>
      %166 = arith.subi %165, %162 : i32
      %c0_i32_46 = arith.constant 0 : i32
      %167 = arith.cmpi sgt, %166, %c0_i32_46 : i32
      %168 = arith.andi %76, %167 : i1
      %c-1_i32_47 = arith.constant -1 : i32
      %169 = arith.select %168, %90, %c-1_i32_47 : i32
      %170 = arith.addi %160, %c1_i32_31 : i32
      %171 = arith.index_cast %170 : i32 to index
      %172 = memref.load %arg4[%171] : memref<24xi32, #tpu.memory_space<smem>>
      memref.store %169, %arg4[%171] : memref<24xi32, #tpu.memory_space<smem>>
      %173 = arith.addi %160, %c1_i32_31 : i32
      %174 = arith.index_cast %173 : i32 to index
      %175 = memref.load %arg3[%174] : memref<24xi32, #tpu.memory_space<smem>>
      %176 = arith.muli %175, %166 : i32
      %c15_i32_48 = arith.constant 15 : i32
      %177 = arith.shrsi %176, %c15_i32_48 : i32
      %178 = arith.addi %162, %177 : i32
      %c63_i32_49 = arith.constant 63 : i32
      %179 = arith.minsi %178, %c63_i32_49 : i32
      %180 = arith.index_cast %179 : i32 to index
      %181 = memref.load %arg0[%180] : memref<64xi32, #tpu.memory_space<smem>>
      %182 = arith.select %168, %181, %90 : i32
      %c9_i32_50 = arith.constant 9 : i32
      %183 = arith.addi %1, %c9_i32_50 : i32
      %184 = arith.index_cast %113 : i32 to index
      %185 = memref.load %arg1[%184] : memref<17xi32, #tpu.memory_space<smem>>
      %c1_i32_51 = arith.constant 1 : i32
      %186 = arith.addi %113, %c1_i32_51 : i32
      %187 = arith.index_cast %186 : i32 to index
      %188 = memref.load %arg1[%187] : memref<17xi32, #tpu.memory_space<smem>>
      %189 = arith.subi %188, %185 : i32
      %c0_i32_52 = arith.constant 0 : i32
      %190 = arith.cmpi sgt, %189, %c0_i32_52 : i32
      %191 = arith.andi %99, %190 : i1
      %c-1_i32_53 = arith.constant -1 : i32
      %192 = arith.select %191, %113, %c-1_i32_53 : i32
      %193 = arith.addi %183, %c1_i32_31 : i32
      %194 = arith.index_cast %193 : i32 to index
      %195 = memref.load %arg4[%194] : memref<24xi32, #tpu.memory_space<smem>>
      memref.store %192, %arg4[%194] : memref<24xi32, #tpu.memory_space<smem>>
      %196 = arith.addi %183, %c1_i32_31 : i32
      %197 = arith.index_cast %196 : i32 to index
      %198 = memref.load %arg3[%197] : memref<24xi32, #tpu.memory_space<smem>>
      %199 = arith.muli %198, %189 : i32
      %c15_i32_54 = arith.constant 15 : i32
      %200 = arith.shrsi %199, %c15_i32_54 : i32
      %201 = arith.addi %185, %200 : i32
      %c63_i32_55 = arith.constant 63 : i32
      %202 = arith.minsi %201, %c63_i32_55 : i32
      %203 = arith.index_cast %202 : i32 to index
      %204 = memref.load %arg0[%203] : memref<64xi32, #tpu.memory_space<smem>>
      %205 = arith.select %191, %204, %113 : i32
      %c2_i32_56 = arith.constant 2 : i32
      %c0_i32_57 = arith.constant 0 : i32
      %206 = arith.addi %1, %c0_i32_57 : i32
      %207 = arith.index_cast %136 : i32 to index
      %208 = memref.load %arg1[%207] : memref<17xi32, #tpu.memory_space<smem>>
      %c1_i32_58 = arith.constant 1 : i32
      %209 = arith.addi %136, %c1_i32_58 : i32
      %210 = arith.index_cast %209 : i32 to index
      %211 = memref.load %arg1[%210] : memref<17xi32, #tpu.memory_space<smem>>
      %212 = arith.subi %211, %208 : i32
      %c0_i32_59 = arith.constant 0 : i32
      %213 = arith.cmpi sgt, %212, %c0_i32_59 : i32
      %214 = arith.andi %122, %213 : i1
      %c-1_i32_60 = arith.constant -1 : i32
      %215 = arith.select %214, %136, %c-1_i32_60 : i32
      %216 = arith.addi %206, %c2_i32_56 : i32
      %217 = arith.index_cast %216 : i32 to index
      %218 = memref.load %arg4[%217] : memref<24xi32, #tpu.memory_space<smem>>
      memref.store %215, %arg4[%217] : memref<24xi32, #tpu.memory_space<smem>>
      %219 = arith.addi %206, %c2_i32_56 : i32
      %220 = arith.index_cast %219 : i32 to index
      %221 = memref.load %arg3[%220] : memref<24xi32, #tpu.memory_space<smem>>
      %222 = arith.muli %221, %212 : i32
      %c15_i32_61 = arith.constant 15 : i32
      %223 = arith.shrsi %222, %c15_i32_61 : i32
      %224 = arith.addi %208, %223 : i32
      %c63_i32_62 = arith.constant 63 : i32
      %225 = arith.minsi %224, %c63_i32_62 : i32
      %226 = arith.index_cast %225 : i32 to index
      %227 = memref.load %arg0[%226] : memref<64xi32, #tpu.memory_space<smem>>
      %228 = arith.select %214, %227, %136 : i32
      %c3_i32_63 = arith.constant 3 : i32
      %229 = arith.addi %1, %c3_i32_63 : i32
      %230 = arith.index_cast %159 : i32 to index
      %231 = memref.load %arg1[%230] : memref<17xi32, #tpu.memory_space<smem>>
      %c1_i32_64 = arith.constant 1 : i32
      %232 = arith.addi %159, %c1_i32_64 : i32
      %233 = arith.index_cast %232 : i32 to index
      %234 = memref.load %arg1[%233] : memref<17xi32, #tpu.memory_space<smem>>
      %235 = arith.subi %234, %231 : i32
      %c0_i32_65 = arith.constant 0 : i32
      %236 = arith.cmpi sgt, %235, %c0_i32_65 : i32
      %237 = arith.andi %145, %236 : i1
      %c-1_i32_66 = arith.constant -1 : i32
      %238 = arith.select %237, %159, %c-1_i32_66 : i32
      %239 = arith.addi %229, %c2_i32_56 : i32
      %240 = arith.index_cast %239 : i32 to index
      %241 = memref.load %arg4[%240] : memref<24xi32, #tpu.memory_space<smem>>
      memref.store %238, %arg4[%240] : memref<24xi32, #tpu.memory_space<smem>>
      %242 = arith.addi %229, %c2_i32_56 : i32
      %243 = arith.index_cast %242 : i32 to index
      %244 = memref.load %arg3[%243] : memref<24xi32, #tpu.memory_space<smem>>
      %245 = arith.muli %244, %235 : i32
      %c15_i32_67 = arith.constant 15 : i32
      %246 = arith.shrsi %245, %c15_i32_67 : i32
      %247 = arith.addi %231, %246 : i32
      %c63_i32_68 = arith.constant 63 : i32
      %248 = arith.minsi %247, %c63_i32_68 : i32
      %249 = arith.index_cast %248 : i32 to index
      %250 = memref.load %arg0[%249] : memref<64xi32, #tpu.memory_space<smem>>
      %251 = arith.select %237, %250, %159 : i32
      %c6_i32_69 = arith.constant 6 : i32
      %252 = arith.addi %1, %c6_i32_69 : i32
      %253 = arith.index_cast %182 : i32 to index
      %254 = memref.load %arg1[%253] : memref<17xi32, #tpu.memory_space<smem>>
      %c1_i32_70 = arith.constant 1 : i32
      %255 = arith.addi %182, %c1_i32_70 : i32
      %256 = arith.index_cast %255 : i32 to index
      %257 = memref.load %arg1[%256] : memref<17xi32, #tpu.memory_space<smem>>
      %258 = arith.subi %257, %254 : i32
      %c0_i32_71 = arith.constant 0 : i32
      %259 = arith.cmpi sgt, %258, %c0_i32_71 : i32
      %260 = arith.andi %168, %259 : i1
      %c-1_i32_72 = arith.constant -1 : i32
      %261 = arith.select %260, %182, %c-1_i32_72 : i32
      %262 = arith.addi %252, %c2_i32_56 : i32
      %263 = arith.index_cast %262 : i32 to index
      %264 = memref.load %arg4[%263] : memref<24xi32, #tpu.memory_space<smem>>
      memref.store %261, %arg4[%263] : memref<24xi32, #tpu.memory_space<smem>>
      %265 = arith.addi %252, %c2_i32_56 : i32
      %266 = arith.index_cast %265 : i32 to index
      %267 = memref.load %arg3[%266] : memref<24xi32, #tpu.memory_space<smem>>
      %268 = arith.muli %267, %258 : i32
      %c15_i32_73 = arith.constant 15 : i32
      %269 = arith.shrsi %268, %c15_i32_73 : i32
      %270 = arith.addi %254, %269 : i32
      %c63_i32_74 = arith.constant 63 : i32
      %271 = arith.minsi %270, %c63_i32_74 : i32
      %272 = arith.index_cast %271 : i32 to index
      %273 = memref.load %arg0[%272] : memref<64xi32, #tpu.memory_space<smem>>
      %274 = arith.select %260, %273, %182 : i32
      %c9_i32_75 = arith.constant 9 : i32
      %275 = arith.addi %1, %c9_i32_75 : i32
      %276 = arith.index_cast %205 : i32 to index
      %277 = memref.load %arg1[%276] : memref<17xi32, #tpu.memory_space<smem>>
      %c1_i32_76 = arith.constant 1 : i32
      %278 = arith.addi %205, %c1_i32_76 : i32
      %279 = arith.index_cast %278 : i32 to index
      %280 = memref.load %arg1[%279] : memref<17xi32, #tpu.memory_space<smem>>
      %281 = arith.subi %280, %277 : i32
      %c0_i32_77 = arith.constant 0 : i32
      %282 = arith.cmpi sgt, %281, %c0_i32_77 : i32
      %283 = arith.andi %191, %282 : i1
      %c-1_i32_78 = arith.constant -1 : i32
      %284 = arith.select %283, %205, %c-1_i32_78 : i32
      %285 = arith.addi %275, %c2_i32_56 : i32
      %286 = arith.index_cast %285 : i32 to index
      %287 = memref.load %arg4[%286] : memref<24xi32, #tpu.memory_space<smem>>
      memref.store %284, %arg4[%286] : memref<24xi32, #tpu.memory_space<smem>>
      %288 = arith.addi %275, %c2_i32_56 : i32
      %289 = arith.index_cast %288 : i32 to index
      %290 = memref.load %arg3[%289] : memref<24xi32, #tpu.memory_space<smem>>
      %291 = arith.muli %290, %281 : i32
      %c15_i32_79 = arith.constant 15 : i32
      %292 = arith.shrsi %291, %c15_i32_79 : i32
      %293 = arith.addi %277, %292 : i32
      %c63_i32_80 = arith.constant 63 : i32
      %294 = arith.minsi %293, %c63_i32_80 : i32
      %295 = arith.index_cast %294 : i32 to index
      %296 = memref.load %arg0[%295] : memref<64xi32, #tpu.memory_space<smem>>
      %297 = arith.select %283, %296, %205 : i32
      %c3_i32_81 = arith.constant 3 : i32
    }
    %c2_i32_0 = arith.constant 2 : i32
    return
  }
}

</mosaic_0001>

<bundles_post_ra>
// kernel: tpu_custom_call.1
= control target key start
LH: loop header
LB: loop body
LE: loop exit
PB: predicated region body
PF: predicated region fallthrough
CT: control target
= control target key end

     0   :  { %9 = vsyncpa [#allocation3], 0  ;;  %s737_s0 = inlined_call_operand.hbm [shape: s32[64], index: 0, kind: input, shape index: {}]   ;;  %s738_s1 = inlined_call_operand.vmem [shape: s32[17], index: 1, kind: input, shape index: {}]   ;;  %s739_s2 = inlined_call_operand.vmem [shape: s32[8], index: 2, kind: input, shape index: {}]   ;;  %s740_s3 = inlined_call_operand.vmem [shape: s32[24], index: 3, kind: input, shape index: {}]   ;;  %s741_s4 = inlined_call_operand.hbm [shape: s32[24], index: 4, kind: output, shape index: {}]  }
   0x1   :  { %10 = vsyncpa [#allocation5], 0 }
   0x2   :  { %11 = vsyncpa [#allocation8], 0  ;;  %s37_s17 = sshll.u32 %s739_s2, 4  ;;  %s38_s17 = int_to_ptr.vmem [resolvable:$true] %s37_s17 }
   0x3   :  { %12 = vsyncpa [#allocation4], 0  ;;  %s368_s18 = scalar_lea.vmem %s38_s17, 16  ;;  %p373_p1 = scmp.lt.s32.totalorder %s38_s17, %s38_s17 }
   0x4   :  { %p369_p0 = scmp.ne.s32.totalorder %s38_s17, %s368_s18  ;;  %p374_p2 = scmp.lt.s32.totalorder %s368_s18, %s368_s18 }
   0x6   :  { %p375_p3 = por %p374_p2, %p373_p1 }
   0x8   :  { %p376_p4 = pnand %p375_p3, %p369_p0 }
   0xa   :  { %379 = shalt.err (!%p376_p4)
}
   0xb   :  { %s440_s19 = smov [#allocation7]   ;;  %s380_s22 = scalar_lea.hbm %s737_s0, 16 }
   0xc   :  { %40 = dma.vmem_to_smem %s38_s17, 16, %s440_s19, [#allocation8]  }
   0xd   :  { %p381_p5 = scmp.ne.s32.totalorder %s737_s0, %s380_s22  ;;  %p384_p6 = scmp.lt.u32.totalorder %s380_s22, %s737_s0 }
   0xf   :  { %p386_p7 = pnand %p384_p6, %p381_p5 }
  0x11   :  { %389 = shalt.err (!%p386_p7)
}
  0x12   :  { %s441_s26 = smov [#allocation2]   ;;  %s27_s5 = sshll.u32 %s738_s1, 4  ;;  %s28_s5 = int_to_ptr.vmem [resolvable:$true] %s27_s5 }
  0x13   :  { %20 = dma.hbm_to_smem %s737_s0, 16, %s441_s26, [#allocation3]  }
  0x14   :  { %s47_s8 = sshll.u32 %s740_s3, 4  ;;  %s390_s9 = scalar_lea.vmem %s28_s5, 16  ;;  %s48_s8 = int_to_ptr.vmem [resolvable:$true] %s47_s8 }
  0x15   :  { %p391_p8 = scmp.ne.s32.totalorder %s28_s5, %s390_s9  ;;  %p395_p9 = scmp.lt.s32.totalorder %s28_s5, %s28_s5 }
  0x16   :  { %p396_p10 = scmp.lt.s32.totalorder %s390_s9, %s390_s9 }
  0x18   :  { %p397_p11 = por %p396_p10, %p395_p9 }
  0x1a   :  { %p398_p12 = pnand %p397_p11, %p391_p8 }
  0x1c   :  { %401 = shalt.err (!%p398_p12)
}
  0x1d   :  { %s442_s10 = smov [#allocation6]   ;;  %s402_s0 = scalar_lea.vmem %s48_s8, 16 }
  0x1e   :  { %30 = dma.vmem_to_smem %s28_s5, 16, %s442_s10, [#allocation5]  }
  0x1f   :  { %p403_p13 = scmp.ne.s32.totalorder %s48_s8, %s402_s0  ;;  %p407_p0 = scmp.lt.s32.totalorder %s48_s8, %s48_s8 }
  0x20   :  { %p408_p1 = scmp.lt.s32.totalorder %s402_s0, %s402_s0 }
  0x22   :  { %p409_p2 = por %p408_p1, %p407_p0 }
  0x24   :  { %p410_p3 = pnand %p409_p2, %p403_p13 }
  0x26   :  { %413 = shalt.err (!%p410_p3)
}
  0x27   :  { %s443_s1 = smov [#allocation9]  }
  0x28   :  { %50 = dma.vmem_to_smem %s48_s8, 16, %s443_s1, [#allocation8]  }
  0x29   :  { %428 = dma.done.wait [#allocation3], 16  }
  0x2a   :  { %429 = vsyncadd [#allocation3], 4294967280 }
  0x2b   :  { %430 = dma.done.wait [#allocation5], 16  }
  0x2c   :  { %431 = vsyncadd [#allocation5], 4294967280 }
  0x2d   :  { %432 = dma.done.wait [#allocation8], 32  }
  0x2e   :  { %433 = vsyncadd [#allocation8], 4294967264 }
  0x2f   :  { %63 = sfence }
  0x30   :  { %s491_s3 = smov 0  }
  0x31 LB: > { %s334_s11 = sshll.u32 %s438_s3, 2  ;;  %s500_s14 = smul.u32 12, %s438_s3  ;;  %s438_s3 = sphi %s491_s3, %s69_s3  }
  0x32   : > { %s497_s12 = sld [smem:[#allocation7 + %s334_s11]]  ;;  %s74_s13 = sadd.s32 1, %s334_s11 }
  0x33   : > { %s77_s15 = sadd.s32 2, %s334_s11  ;;  %s502_s16 = sld [smem:[#allocation7 + %s74_s13]] }
  0x34   : > { %s80_s17 = sadd.s32 3, %s334_s11  ;;  %s504_s18 = sld [smem:[#allocation7 + %s77_s15]] }
  0x35   : > { %s506_s19 = sld [smem:[#allocation7 + %s80_s17]]  ;;  %s101_s21 = sadd.s32 3, %s500_s14 }
  0x36   : > { %s93_s23 = sld [smem:[#allocation9 + %s500_s14]]  ;;  %s513_s2 = scalar_lea.smem [#allocation10], %s500_s14 }
  0x37   : > { %s298_s25 = scalar_lea.smem %s513_s2, 3 [#allocation10]  ;;  %s517_s26 = sld [smem:[#allocation9 + %s101_s21]] }
  0x38   : > { %s83_s20 = sld [smem:[#allocation6 + %s497_s12]]  ;;  %s84_s22 = sadd.s32 1, %s497_s12 }
  0x39   : > { %s85_s24 = sld [smem:[#allocation6 + %s84_s22]]  ;;  %p73_p4 = scmp.ge.s32.totalorder %s497_s12, 0 }
  0x3a   : > { %p76_p5 = scmp.ge.s32.totalorder %s502_s16, 0  ;;  %s103_s27 = sadd.s32 1, %s502_s16 }
  0x3b   : > { %s102_s28 = sld [smem:[#allocation6 + %s502_s16]]  ;;  %p79_p6 = scmp.ge.s32.totalorder %s504_s18, 0 }
  0x3c   : > { %s104_s29 = sld [smem:[#allocation6 + %s103_s27]]  ;;  %s120_s30 = sadd.s32 6, %s500_s14 }
  0x3d   : > { %s525_s5 = sld [smem:[#allocation6 + %s504_s18]]  ;;  %s122_s6 = sadd.s32 1, %s504_s18 }
  0x3e   : > { %s301_s8 = scalar_lea.smem %s513_s2, 6 [#allocation10]  ;;  %s123_s10 = sld [smem:[#allocation6 + %s122_s6]] }
  0x3f   : > { %s86_s7 = ssub.s32 %s85_s24, %s83_s20  ;;  %s529_s0 = sld [smem:[#allocation9 + %s120_s30]] }
  0x40   : > { %p87_p7 = scmp.gt.s32.totalorder %s86_s7, 0  ;;  %s94_s9 = smul.u32 %s93_s23, %s86_s7 }
  0x41   : > { %s139_s11 = sadd.s32 9, %s500_s14  ;;  %p82_p1 = scmp.ge.s32.totalorder %s506_s19, 0 }
  0x42   : > { %s95_s1 = sshra.s32 %s94_s9, 15  ;;  %p534_p8 = pnand %p87_p7, %p73_p4 }
  0x43   : > { %s96_s15 = sadd.s32 %s95_s1, %s83_s20  ;;  %s105_s17 = ssub.s32 %s104_s29, %s102_s28 }
  0x44   : > { %p97_p9 = scmp.lt.s32.totalorder %s96_s15, 63  ;;  %p106_p10 = scmp.gt.s32.totalorder %s105_s17, 0 }
  0x45   : > { %s335_s21 = scalar_select %p534_p8, 4294967295, %s497_s12 }
  0x46   : > { %s751_s15 = smov (!%p97_p9, %s96_s15), 63  ;;  %s113_s23 = smul.u32 %s517_s26, %s105_s17 }
  0x47   : > { %92 = sst [smem:[%s513_s2]] %s335_s21  ;;  %p545_p11 = pnand %p106_p10, %p76_p5 }
  0x48   : > { %s99_s22 = sld [smem:[#allocation2 + %s751_s15]]  ;;  %s114_s27 = sshra.s32 %s113_s23, 15 }
  0x49   : > { %s550_s20 = sld [smem:[#allocation6 + %s506_s19]]  ;;  %s124_s29 = ssub.s32 %s123_s10, %s525_s5 }
  0x4a   : > { %s115_s30 = sadd.s32 %s114_s27, %s102_s28  ;;  %p125_p12 = scmp.gt.s32.totalorder %s124_s29, 0 }
  0x4b   : > { %s337_s6 = scalar_select %p545_p11, 4294967295, %s502_s16 }
  0x4c   : > { %p116_p13 = scmp.lt.s32.totalorder %s115_s30, 63  ;;  %s141_s26 = sadd.s32 1, %s506_s19 }
  0x4d   : > { %111 = sst [smem:[%s298_s25]] %s337_s6  ;;  %p566_p0 = pnand %p125_p12, %p79_p6 }
  0x4e   : > { %s753_s12 = smov (!%p534_p8, %s497_s12), %s99_s22  ;;  %s755_s30 = smov (!%p116_p13, %s115_s30), 63 }
  0x4f   : > { %s339_s7 = scalar_select %p566_p0, 4294967295, %s504_s18 }
  0x50   : > { %s118_s9 = sld [smem:[#allocation2 + %s755_s30]]  ;;  %s132_s10 = smul.u32 %s529_s0, %s124_s29 }
  0x51   : > { %130 = sst [smem:[%s301_s8]] %s339_s7  ;;  %s159_s22 = sadd.s32 1, %s753_s12 }
  0x52   : > { %s142_s1 = sld [smem:[#allocation6 + %s141_s26]]  ;;  %s133_s25 = sshra.s32 %s132_s10, 15 }
  0x53   : > { %s134_s15 = sadd.s32 %s133_s25, %s525_s5  ;;  %s150_s17 = sld [smem:[#allocation9 + %s139_s11]] }
  0x54   : > { %p135_p2 = scmp.lt.s32.totalorder %s134_s15, 63  ;;  %s581_s21 = sld [smem:[#allocation6 + %s753_s12]] }
  0x55   : > { %s166_s23 = sadd.s32 1, %s500_s14  ;;  %s160_s5 = sld [smem:[#allocation6 + %s159_s22]] }
  0x56   : > { %s757_s16 = smov (!%p545_p11, %s502_s16), %s118_s9  ;;  %s759_s15 = smov (!%p135_p2, %s134_s15), 63 }
  0x57   : > { %s137_s0 = sld [smem:[#allocation2 + %s759_s15]]  ;;  %p89_p4 = pneg %p534_p8 }
  0x58   : > { %s143_s8 = ssub.s32 %s142_s1, %s550_s20  ;;  %s304_s27 = scalar_lea.smem %s513_s2, 9 [#allocation10] }
  0x59   : > { %p144_p3 = scmp.gt.s32.totalorder %s143_s8, 0  ;;  %s151_s11 = smul.u32 %s150_s17, %s143_s8 }
  0x5a   : > { %s169_s29 = sld [smem:[#allocation9 + %s166_s23]]  ;;  %s178_s1 = sadd.s32 1, %s757_s16 }
  0x5b   : > { %p596_p5 = pnand %p144_p3, %p82_p1  ;;  %s152_s6 = sshra.s32 %s151_s11, 15 }
  0x5c   : > { %s153_s26 = sadd.s32 %s152_s6, %s550_s20  ;;  %s602_s7 = sld [smem:[#allocation6 + %s757_s16]] }
  0x5d   : > { %s341_s9 = scalar_select %p596_p5, 4294967295, %s506_s19 }
  0x5e   : > { %s761_s18 = smov (!%p566_p0, %s504_s18), %s137_s0  ;;  %p154_p6 = scmp.lt.s32.totalorder %s153_s26, 63 }
  0x5f   : > { %149 = sst [smem:[%s304_s27]] %s341_s9  ;;  %s161_s10 = ssub.s32 %s160_s5, %s581_s21 }
  0x60   : > { %s763_s26 = smov (!%p154_p6, %s153_s26), 63  ;;  %p162_p7 = scmp.gt.s32.totalorder %s161_s10, 0 }
  0x61   : > { %s170_s20 = smul.u32 %s169_s29, %s161_s10  ;;  %s156_s25 = sld [smem:[#allocation2 + %s763_s26]] }
  0x62   : > { %s179_s15 = sld [smem:[#allocation6 + %s178_s1]]  ;;  %s307_s17 = scalar_lea.smem %s513_s2, 1 [#allocation10] }
  0x63   : > { %s171_s22 = sshra.s32 %s170_s20, 15  ;;  %p618_p9 = pnand %p162_p7, %p89_p4 }
  0x64   : > { %s172_s8 = sadd.s32 %s171_s22, %s581_s21  ;;  %s185_s5 = sadd.s32 4, %s500_s14 }
  0x65   : > { %p173_p10 = scmp.lt.s32.totalorder %s172_s8, 63  ;;  %p108_p8 = pneg %p545_p11 }
  0x66   : > { %s343_s0 = scalar_select %p618_p9, 4294967295, %s753_s12 }
  0x67   : > { %s765_s8 = smov (!%p173_p10, %s172_s8), 63  ;;  %s767_s19 = smov (!%p596_p5, %s506_s19), %s156_s25 }
  0x68   : > { %168 = sst [smem:[%s307_s17]] %s343_s0  ;;  %s180_s11 = ssub.s32 %s179_s15, %s602_s7 }
  0x69   : > { %s175_s13 = sld [smem:[#allocation2 + %s765_s8]]  ;;  %p181_p12 = scmp.gt.s32.totalorder %s180_s11, 0 }
  0x6a   : > { %s188_s21 = sld [smem:[#allocation9 + %s185_s5]]  ;;  %s197_s29 = sadd.s32 1, %s761_s18 }
  0x6b   : > { %s196_s27 = sld [smem:[#allocation6 + %s761_s18]]  ;;  %p127_p13 = pneg %p566_p0 }
  0x6c   : > { %s198_s6 = sld [smem:[#allocation6 + %s197_s29]]  ;;  %p639_p1 = pnand %p181_p12, %p108_p8 }
  0x6d   : > { %s204_s9 = sadd.s32 7, %s500_s14  ;;  %s310_s24 = scalar_lea.smem %s513_s2, 4 [#allocation10] }
  0x6e   : > { %s207_s10 = sld [smem:[#allocation9 + %s204_s9]]  ;;  %s216_s8 = sadd.s32 1, %s767_s19 }
  0x6f   : > { %s769_s12 = smov (!%p618_p9, %s753_s12), %s175_s13  ;;  %s654_s25 = sld [smem:[#allocation6 + %s767_s19]] }
  0x70   : > { %s345_s1 = scalar_select %p639_p1, 4294967295, %s757_s16 }
  0x71   : > { %s189_s20 = smul.u32 %s188_s21, %s180_s11  ;;  %s313_s5 = scalar_lea.smem %s513_s2, 7 [#allocation10] }
  0x72   : > { %187 = sst [smem:[%s310_s24]] %s345_s1  ;;  %s199_s15 = ssub.s32 %s198_s6, %s196_s27 }
  0x73   : > { %s190_s17 = sshra.s32 %s189_s20, 15  ;;  %p200_p11 = scmp.gt.s32.totalorder %s199_s15, 0 }
  0x74   : > { %s191_s22 = sadd.s32 %s190_s17, %s602_s7  ;;  %s208_s0 = smul.u32 %s207_s10, %s199_s15 }
  0x75   : > { %p192_p2 = scmp.lt.s32.totalorder %s191_s22, 63  ;;  %s217_s13 = sld [smem:[#allocation6 + %s216_s8]] }
  0x76   : > { %p662_p3 = pnand %p200_p11, %p127_p13  ;;  %s209_s21 = sshra.s32 %s208_s0, 15 }
  0x77   : > { %s771_s22 = smov (!%p192_p2, %s191_s22), 63  ;;  %s210_s29 = sadd.s32 %s209_s21, %s196_s27 }
  0x78   : > { %s194_s7 = sld [smem:[#allocation2 + %s771_s22]]  ;;  %p146_p4 = pneg %p596_p5 }
  0x79   : > { %s347_s6 = scalar_select %p662_p3, 4294967295, %s761_s18 }
  0x7a   : > { %p211_p6 = scmp.lt.s32.totalorder %s210_s29, 63  ;;  %s223_s9 = sadd.s32 10, %s500_s14 }
  0x7b   : > { %206 = sst [smem:[%s313_s5]] %s347_s6  ;;  %s218_s28 = ssub.s32 %s217_s13, %s654_s25 }
  0x7c   : > { %s773_s29 = smov (!%p211_p6, %s210_s29), 63  ;;  %p219_p0 = scmp.gt.s32.totalorder %s218_s28, 0 }
  0x7d   : > { %s213_s27 = sld [smem:[#allocation2 + %s773_s29]]  ;;  %s316_s24 = scalar_lea.smem %s513_s2, 10 [#allocation10] }
  0x7e   : > { %s775_s16 = smov (!%p639_p1, %s757_s16), %s194_s7  ;;  %p679_p7 = pnand %p219_p0, %p146_p4 }
  0x7f   : > { %s226_s10 = sld [smem:[#allocation9 + %s223_s9]]  ;;  %s235_s20 = sadd.s32 1, %s769_s12 }
  0x80   : > { %s234_s1 = sld [smem:[#allocation6 + %s769_s12]]  ;;  %p164_p5 = pneg %p618_p9 }
  0x81   : > { %s349_s14 = scalar_select %p679_p7, 4294967295, %s767_s19 }
  0x82   : > { %s236_s15 = sld [smem:[#allocation6 + %s235_s20]]  ;;  %s246_s8 = sadd.s32 1, %s775_s16 }
  0x83   : > { %225 = sst [smem:[%s316_s24]] %s349_s14  ;;  %s777_s18 = smov (!%p662_p3, %s761_s18), %s213_s27 }
  0x84   : > { %s245_s17 = sld [smem:[#allocation6 + %s775_s16]]  ;;  %p183_p10 = pneg %p639_p1 }
  0x85   : > { %s227_s22 = smul.u32 %s226_s10, %s218_s28  ;;  %s247_s5 = sld [smem:[#allocation6 + %s246_s8]] }
  0x86   : > { %s319_s13 = scalar_lea.smem %s513_s2, 2 [#allocation10]  ;;  %s256_s29 = sld [smem:[#allocation6 + %s777_s18]] }
  0x87   : > { %s228_s0 = sshra.s32 %s227_s22, 15  ;;  %s257_s6 = sadd.s32 1, %s777_s18 }
  0x88   : > { %s229_s21 = sadd.s32 %s228_s0, %s654_s25  ;;  %s237_s7 = ssub.s32 %s236_s15, %s234_s1 }
  0x89   : > { %p230_p8 = scmp.lt.s32.totalorder %s229_s21, 63  ;;  %p238_p12 = scmp.gt.s32.totalorder %s237_s7, 0 }
  0x8a   : > { %s258_s25 = sld [smem:[#allocation6 + %s257_s6]]  ;;  %s322_s27 = scalar_lea.smem %s513_s2, 5 [#allocation10] }
  0x8b   : > { %s779_s21 = smov (!%p230_p8, %s229_s21), 63  ;;  %p239_p13 = pnand %p238_p12, %p164_p5 }
  0x8c   : > { %s248_s28 = ssub.s32 %s247_s5, %s245_s17  ;;  %s232_s9 = sld [smem:[#allocation2 + %s779_s21]] }
  0x8d   : > { %p249_p11 = scmp.gt.s32.totalorder %s248_s28, 0  ;;  %s781_s12 = smov (%p239_p13, %s769_s12), 4294967295 }
  0x8e   : > { %244 = sst [smem:[%s319_s13]] %s781_s12  ;;  %p202_p9 = pneg %p662_p3 }
  0x8f   : > { %p250_p2 = pnand %p249_p11, %p183_p10  ;;  %s325_s26 = scalar_lea.smem %s513_s2, 8 [#allocation10] }
  0x90   : > { %s259_s23 = ssub.s32 %s258_s25, %s256_s29  ;;  %p221_p1 = pneg %p679_p7 }
  0x91   : > { %s783_s16 = smov (%p250_p2, %s775_s16), 4294967295  ;;  %p260_p4 = scmp.gt.s32.totalorder %s259_s23, 0 }
  0x92   : > { %s785_s19 = smov (!%p679_p7, %s767_s19), %s232_s9  ;;  %255 = sst [smem:[%s322_s27]] %s783_s16 }
  0x93   : > { %s267_s24 = sld [smem:[#allocation6 + %s785_s19]]  ;;  %s268_s10 = sadd.s32 1, %s785_s19 }
  0x94   : > { %s269_s1 = sld [smem:[#allocation6 + %s268_s10]]  ;;  %p261_p6 = pnand %p260_p4, %p202_p9 }
  0x95   : > { %s328_s20 = scalar_lea.smem %s513_s2, 11 [#allocation10]  ;;  %s69_s3 = sadd.s32 1, %s438_s3  }
  0x96   : > { %s787_s18 = smov (%p261_p6, %s777_s18), 4294967295  ;;  %p66_p3 = scmp.ge.s32.totalorder %s69_s3, 2  }
  0x97   : > { %266 = sst [smem:[%s325_s26]] %s787_s18  ;;  %s414_s14 = scalar_lea.hbm (%p66_p3), %s741_s4, 16 }
  0x98   :  { %p415_p7 = scmp.ne.s32.totalorder (%p66_p3), %s741_s4, %s414_s14  ;;  %p418_p10 = scmp.lt.u32.totalorder (%p66_p3), %s414_s14, %s741_s4 }
  0x9a   : > { %s270_s12 = ssub.s32 %s269_s1, %s267_s24  ;;  %68 = sbr.rel (!%p66_p3) target bundleno = 49 (0x31), region = 71 }
  0x9b   : > { %p271_p0 = scmp.gt.s32.totalorder %s270_s12, 0  ;;  %p420_p8 = pnand (%p66_p3), %p418_p10, %p415_p7 }
  0x9d   : > { %p272_p5 = pnand %p271_p0, %p221_p1 }
  0x9f   : > { %s789_s19 = smov (%p272_p5, %s785_s19), 4294967295 }
  0xa0   : > { %277 = sst [smem:[%s328_s20]] %s789_s19 }
  0xa1   :  { %423 = shalt.err (!%p420_p8)
}
  0xa2   :  { %s444_s19 = smov [#allocation10]  }
  0xa3   :  { %285 = dma.smem_to_hbm %s444_s19, 16, %s741_s4, [#allocation4]  }
  0xa4   :  { %434 = dma.done.wait [#allocation4], 16  }
  0xa5   :  { %435 = vsyncadd [#allocation4], 4294967280 }
  0xa6   :  { %289 = sfence }
  0xa7   :  { %290 = vsyncpa [#allocation3], 1 }
  0xa8   :  { %291 = vsyncpa [#allocation4], 1 }
  0xa9   :  { %292 = vsyncpa [#allocation5], 1 }
  0xaa   :  { %293 = vsyncpa [#allocation8], 1 }

</bundles_post_ra>
